<compile_context>
chip_gen: v6e
topology: v6e:2x2x1
jax: 0.10.0
libtpu: 0.0.40
codegen_flags: <defaults>
</compile_context>

<pallas_src>
import functools

import jax
import jax.numpy as jnp
from jax.experimental import pallas as pl
from jax.experimental.pallas import tpu as pltpu


def _round_up(n, m):
    return (n + m - 1) // m * m


def _res_block_linear_kernel(x_ref, w1_ref, b1_ref, w2_ref, b2_ref, o_ref):
    # lin1 + ReLU: bf16 x bf16 -> f32 accumulate on the MXU.
    # (bf16 cast of the LHS happens right here, not earlier, to keep vreg
    # pressure low.)
    h = jnp.dot(x_ref[...].astype(jnp.bfloat16), w1_ref[...],
                preferred_element_type=jnp.float32)          # (tb, D1)
    h = jnp.maximum(h + b1_ref[...], 0.0)

    # lin2 + bias + residual + ReLU.  The residual is re-read from the
    # still-resident VMEM input tile only here (short live range, no spills).
    y = jnp.dot(h.astype(jnp.bfloat16), w2_ref[...],
                preferred_element_type=jnp.float32)          # (tb, D0)
    y = y + b2_ref[...] + x_ref[...]
    o_ref[...] = jnp.maximum(y, 0.0).astype(o_ref.dtype)


def prepare_res_block_params(w1, b1, w2, b2):
    """One-time host-side prep (call once at init, NOT per forward call).

    w1: (D1, D0) torch-layout lin1 weight; b1: (D1,)
    w2: (D0, D1) torch-layout lin2 weight; b2: (D0,)
    Returns (W1^T bf16, b1 row f32, W2^T bf16, b2 row f32).
    """
    w1_t = jnp.asarray(w1.T, dtype=jnp.bfloat16)               # (D0, D1)
    w2_t = jnp.asarray(w2.T, dtype=jnp.bfloat16)               # (D1, D0)
    b1_r = jnp.asarray(b1, dtype=jnp.float32).reshape(1, -1)   # (1, D1)
    b2_r = jnp.asarray(b2, dtype=jnp.float32).reshape(1, -1)   # (1, D0)
    return w1_t, b1_r, w2_t, b2_r


def _default_block_b(B):
    """Generation-aware batch tile (multiple of 8 sublanes)."""
    try:
        kind = jax.devices()[0].device_kind.lower()
    except Exception:  # pragma: no cover - no device info available
        kind = ""
    multi_tc = "v7" in kind            # v7x: 2 TensorCores per chip
    cap = 1024                         # amortize ~0.35us/step grid overhead
    if multi_tc and B > 8:
        # >=4 grid steps so both TCs get >=2 pipelined steps each.
        return max(8, min(cap, _round_up(-(-B // 4), 8)))
    return max(8, min(cap, _round_up(B, 8)))


@functools.partial(jax.jit, static_argnames=("block_b",))
def _res_block_linear_impl(x, w1_t, b1_r, w2_t, b2_r, *, block_b):
    B, D0 = x.shape
    D1 = w1_t.shape[1]
    grid = (pl.cdiv(B, block_b),)

    # VMEM budget: resident weights/biases (x2 for Pallas' default double
    # buffering of blocks) + double-buffered x/out tiles + f32 temporaries,
    # with 1.5x headroom; clamped to stay portable on v7x (64 MiB physical).
    weight_bytes = w1_t.size * 2 + w2_t.size * 2 + (b1_r.size + b2_r.size) * 4
    tile_bytes = 2 * (block_b * D0 * 4) * 2          # x + out, double-buffered
    temp_bytes = block_b * (D1 + D0) * 4             # h / y f32 temporaries
    vmem_est = 2 * weight_bytes + tile_bytes + temp_bytes
    vmem_limit = min(64 * 1024 * 1024,
                     max(32 * 1024 * 1024, int(vmem_est * 1.5)))

    flops = 4 * B * D0 * D1                          # two matmuls
    bytes_accessed = (x.size * 4 + w1_t.size * 2 + w2_t.size * 2
                      + b1_r.size * 4 + b2_r.size * 4 + B * D0 * 4)

    # Note on ragged B: when B % block_b != 0 the last block is partial;
    # Pallas masks the out-of-range output rows on store, and each output row
    # depends only on its own input row, so visible results are exact.
    return pl.pallas_call(
        _res_block_linear_kernel,
        out_shape=jax.ShapeDtypeStruct((B, D0), x.dtype),
        grid_spec=pltpu.PrefetchScalarGridSpec(
            num_scalar_prefetch=0,
            grid=grid,
            in_specs=[
                pl.BlockSpec((block_b, D0), lambda i: (i, 0)),   # x tile
                pl.BlockSpec((D0, D1), lambda i: (0, 0)),        # W1^T (resident)
                pl.BlockSpec((1, D1), lambda i: (0, 0)),         # b1
                pl.BlockSpec((D1, D0), lambda i: (0, 0)),        # W2^T (resident)
                pl.BlockSpec((1, D0), lambda i: (0, 0)),         # b2
            ],
            out_specs=pl.BlockSpec((block_b, D0), lambda i: (i, 0)),
        ),
        compiler_params=pltpu.CompilerParams(
            dimension_semantics=("parallel",),
            vmem_limit_bytes=vmem_limit),
        cost_estimate=pl.CostEstimate(flops=flops,
                                      transcendentals=0,
                                      bytes_accessed=bytes_accessed),
    )(x, w1_t, b1_r, w2_t, b2_r)


def res_block_linear(x, w1_t, b1_r, w2_t, b2_r, *, block_b=None):
    """ResBlockLinear forward.  Params must come from prepare_res_block_params."""
    if block_b is None:
        block_b = _default_block_b(x.shape[0])
    return _res_block_linear_impl(x, w1_t, b1_r, w2_t, b2_r, block_b=block_b)


def _init_linear_params(key, in_features, out_features, dtype=jnp.float32):
    """Deterministic init matching torch.nn.Linear's U(-1/sqrt(in), 1/sqrt(in))."""
    kw, kb = jax.random.split(key)
    bound = 1.0 / jnp.sqrt(jnp.float32(in_features))
    w = jax.random.uniform(kw, (out_features, in_features), dtype,
                           minval=-bound, maxval=bound)
    b = jax.random.uniform(kb, (out_features,), dtype,
                           minval=-bound, maxval=bound)
    return w, b


def _reference(x, w1, b1, w2, b2):
    h = jnp.maximum(x @ w1.T + b1, 0.0)
    return jnp.maximum(h @ w2.T + b2 + x, 0.0)


if __name__ == "__main__":
    key = jax.random.PRNGKey(0)
    k_x, k_l1, k_l2, k_x2 = jax.random.split(key, 4)

    dims = (32, 64)          # ResBlockLinear(dims): lin1: 32->64, lin2: 64->32
    batch = 8
    x = jax.random.normal(k_x, (batch, dims[0]), jnp.float32)

    w1, b1 = _init_linear_params(k_l1, dims[0], dims[1])  # (64, 32), (64,)
    w2, b2 = _init_linear_params(k_l2, dims[1], dims[0])  # (32, 64), (32,)

    # One-time prep (outside the jitted per-call path).
    params = prepare_res_block_params(w1, b1, w2, b2)

    out = res_block_linear(x, *params)
    out = jax.block_until_ready(out)

    # Pure-JAX f32 reference of the exact PyTorch semantics (kernel runs the
    # matmuls in bf16, so tolerances are loosened accordingly).
    y_ref = _reference(x, w1, b1, w2, b2)
    assert out.shape == x.shape and out.dtype == x.dtype
    assert jnp.allclose(out, y_ref, atol=5e-2, rtol=5e-2), (
        float(jnp.max(jnp.abs(out - y_ref))))

    # Ragged-batch check: B not a multiple of block_b -> partial last block.
    x2 = jax.random.normal(k_x2, (12, dims[0]), jnp.float32)
    out2 = jax.block_until_ready(res_block_linear(x2, *params, block_b=8))
    y2_ref = _reference(x2, w1, b1, w2, b2)
    assert jnp.allclose(out2, y2_ref, atol=5e-2, rtol=5e-2), (
        float(jnp.max(jnp.abs(out2 - y2_ref))))

    print("KERNEL_OK")
</pallas_src>

<mosaic_0001>
module attributes {stable_mosaic.version = 11 : i64} {
  func.func @_res_block_linear_kernel(%arg0: i32, %arg1: memref<8x32xf32, #tpu.memory_space<vmem>>, %arg2: memref<32x64xbf16, #tpu.memory_space<vmem>>, %arg3: memref<1x64xf32, #tpu.memory_space<vmem>>, %arg4: memref<64x32xbf16, #tpu.memory_space<vmem>>, %arg5: memref<1x32xf32, #tpu.memory_space<vmem>>, %arg6: memref<8x32xf32, #tpu.memory_space<vmem>>) attributes {dimension_semantics = [#tpu.dimension_semantics<parallel>], iteration_bounds = array<i64: 1>, scalar_prefetch = 0 : i64, scratch_operands = 0 : i64, tpu.core_type = #tpu.core_type<tc>, window_params = [{transform_indices = @transform_0, window_bounds = array<i64: 8, 32>}, {pipeline_mode = #tpu.pipeline_mode<synchronous>, transform_indices = @transform_1, window_bounds = array<i64: 32, 64>}, {pipeline_mode = #tpu.pipeline_mode<synchronous>, transform_indices = @transform_2, window_bounds = array<i64: 1, 64>}, {pipeline_mode = #tpu.pipeline_mode<synchronous>, transform_indices = @transform_3, window_bounds = array<i64: 64, 32>}, {pipeline_mode = #tpu.pipeline_mode<synchronous>, transform_indices = @transform_4, window_bounds = array<i64: 1, 32>}, {transform_indices = @transform_5, window_bounds = array<i64: 8, 32>}]} {
    %c0 = arith.constant 0 : index
    %c0_0 = arith.constant 0 : index
    %0 = vector.load %arg1[%c0, %c0_0] : memref<8x32xf32, #tpu.memory_space<vmem>>, vector<8x32xf32>
    %1 = arith.truncf %0 : vector<8x32xf32> to vector<8x32xbf16>
    %c0_1 = arith.constant 0 : index
    %c0_2 = arith.constant 0 : index
    %2 = vector.load %arg2[%c0_1, %c0_2] : memref<32x64xbf16, #tpu.memory_space<vmem>>, vector<32x64xbf16>
    %cst = arith.constant dense<0.000000e+00> : vector<8x64xf32>
    %3 = tpu.matmul %1, %2, %cst {dimension_numbers = #tpu.dot_dimension_numbers<[1], [0], [0], [1], [0, 0, 1, 1], [], []>} : vector<8x32xbf16>, vector<32x64xbf16>, vector<8x64xf32> -> vector<8x64xf32>
    %c0_3 = arith.constant 0 : index
    %c0_4 = arith.constant 0 : index
    %4 = vector.load %arg3[%c0_3, %c0_4] : memref<1x64xf32, #tpu.memory_space<vmem>>, vector<1x64xf32>
    %5 = vector.broadcast %4 : vector<1x64xf32> to vector<8x64xf32>
    %6 = arith.addf %3, %5 : vector<8x64xf32>
    %cst_5 = arith.constant 0.000000e+00 : f32
    %7 = vector.broadcast %cst_5 : f32 to vector<8x64xf32>
    %8 = arith.maximumf %6, %7 : vector<8x64xf32>
    %9 = arith.truncf %8 : vector<8x64xf32> to vector<8x64xbf16>
    %c0_6 = arith.constant 0 : index
    %c0_7 = arith.constant 0 : index
    %10 = vector.load %arg4[%c0_6, %c0_7] : memref<64x32xbf16, #tpu.memory_space<vmem>>, vector<64x32xbf16>
    %cst_8 = arith.constant dense<0.000000e+00> : vector<8x32xf32>
    %11 = tpu.matmul %9, %10, %cst_8 {dimension_numbers = #tpu.dot_dimension_numbers<[1], [0], [0], [1], [0, 0, 1, 1], [], []>} : vector<8x64xbf16>, vector<64x32xbf16>, vector<8x32xf32> -> vector<8x32xf32>
    %c0_9 = arith.constant 0 : index
    %c0_10 = arith.constant 0 : index
    %12 = vector.load %arg5[%c0_9, %c0_10] : memref<1x32xf32, #tpu.memory_space<vmem>>, vector<1x32xf32>
    %13 = vector.broadcast %12 : vector<1x32xf32> to vector<8x32xf32>
    %14 = arith.addf %11, %13 : vector<8x32xf32>
    %c0_11 = arith.constant 0 : index
    %c0_12 = arith.constant 0 : index
    %15 = vector.load %arg1[%c0_11, %c0_12] : memref<8x32xf32, #tpu.memory_space<vmem>>, vector<8x32xf32>
    %16 = arith.addf %14, %15 : vector<8x32xf32>
    %cst_13 = arith.constant 0.000000e+00 : f32
    %17 = vector.broadcast %cst_13 : f32 to vector<8x32xf32>
    %18 = arith.maximumf %16, %17 : vector<8x32xf32>
    %c0_14 = arith.constant 0 : index
    %c0_15 = arith.constant 0 : index
    %19 = vector.load %arg6[%c0_14, %c0_15] : memref<8x32xf32, #tpu.memory_space<vmem>>, vector<8x32xf32>
    tpu.vector_store %arg6[%c0_14, %c0_15], %18 {strides = array<i32>} : memref<8x32xf32, #tpu.memory_space<vmem>>, vector<8x32xf32>,
    return
  }
  func.func @transform_0(%arg0: i32) -> (i32, i32) {
    %c0_i32 = arith.constant 0 : i32
    %c0_i32_0 = arith.constant 0 : i32
    return %arg0, %c0_i32 : i32, i32
  }
  func.func @transform_1(%arg0: i32) -> (i32, i32) {
    %c0_i32 = arith.constant 0 : i32
    %c0_i32_0 = arith.constant 0 : i32
    %c0_i32_1 = arith.constant 0 : i32
    return %c0_i32, %c0_i32_0 : i32, i32
  }
  func.func @transform_2(%arg0: i32) -> (i32, i32) {
    %c0_i32 = arith.constant 0 : i32
    %c0_i32_0 = arith.constant 0 : i32
    %c0_i32_1 = arith.constant 0 : i32
    return %c0_i32, %c0_i32_0 : i32, i32
  }
  func.func @transform_3(%arg0: i32) -> (i32, i32) {
    %c0_i32 = arith.constant 0 : i32
    %c0_i32_0 = arith.constant 0 : i32
    %c0_i32_1 = arith.constant 0 : i32
    return %c0_i32, %c0_i32_0 : i32, i32
  }
  func.func @transform_4(%arg0: i32) -> (i32, i32) {
    %c0_i32 = arith.constant 0 : i32
    %c0_i32_0 = arith.constant 0 : i32
    %c0_i32_1 = arith.constant 0 : i32
    return %c0_i32, %c0_i32_0 : i32, i32
  }
  func.func @transform_5(%arg0: i32) -> (i32, i32) {
    %c0_i32 = arith.constant 0 : i32
    %c0_i32_0 = arith.constant 0 : i32
    return %arg0, %c0_i32 : i32, i32
  }
}

</mosaic_0001>

<bundles_post_ra>
// kernel: _res_block_linear_impl.1
= control target key start
LH: loop header
LB: loop body
LE: loop exit
PB: predicated region body
PF: predicated region fallthrough
CT: control target
= control target key end

     0   :  { %v262_v1 = vmov 0.0   ;;  %vm263_vm0 = vmmov 0   ;;  %vm47_vm1 = vcmask 261120   ;;  %s327_s0 = inlined_call_operand.vmem [shape: f32[8,32], index: 0, kind: input, shape index: {}]   ;;  %s328_s1 = inlined_call_operand.vmem [shape: bf16[32,64], index: 1, kind: input, shape index: {}]   ;;  %s329_s2 = inlined_call_operand.vmem [shape: f32[1,64], index: 2, kind: input, shape index: {}]   ;;  %s330_s3 = inlined_call_operand.vmem [shape: bf16[64,32], index: 3, kind: input, shape index: {}]   ;;  %s331_s4 = inlined_call_operand.vmem [shape: f32[1,32], index: 4, kind: input, shape index: {}]   ;;  %s332_s5 = inlined_call_operand.hbm [shape: f32[8,32], index: 5, kind: output, shape index: {}]  }
   0x1   :  { %v234_v0 = vld [vmem:[%s328_s1 + $0x8] sm:$0xff]   ;;  %211 = vmatprep.subr.bf16.mxu0 %v262_v1  ;;  %v235_v2 = vld [vmem:[%s328_s1] sm:$0xff]   ;;  %219 = vmatprep.subr.bf16.mxu1 %v262_v1  ;;  %v236_v4 = vld [vmem:[%s330_s3 + $0x18] sm:$0xff]  }
   0x2   :  { %212 = vmatpush3.bf16.msra.mxu0 %v234_v0  ;;  %215 = vmatprep.mubr.msk.bf16.mxu0 %vm263_vm0, %v262_v1  ;;  %v22_v3 = vld [vmem:[%s327_s0] sm:$0xff]  ;;  %v237_v5 = vld [vmem:[%s330_s3 + $0x10] sm:$0xff]  }
   0x3   :  { %213 = vmatprep.subr.bf16.mxu0 %v262_v1  ;;  %227 = vmatprep.mubr.msk.bf16.mxu1 %vm263_vm0, %v262_v1  ;;  %v23_v6 = vpack.c.bf16 %v22_v3, %v22_v3 }
   0x4   :  { %220 = vmatpush3.bf16.msra.mxu1 %v236_v4 }
   0x5   :  { %221 = vmatprep.subr.bf16.mxu1 %v262_v1 }
   0x6   :  { %214 = vmatpush3.bf16.msra.mxu0 %v235_v2 }
   0x7   :  { %10 = vsyncpa [#allocation3], 0  ;;  %v238_v7 = vld [vmem:[%s330_s3 + $0x8] sm:$0xff]   ;;  %v239_v8 = vld [vmem:[%s330_s3] sm:$0xff]   ;;  %vm132_vm2 = vcmask 523264   ;;  %s264_s3 = smov [#allocation2]  }
   0x8   :  { %222 = vmatpush3.bf16.msra.mxu1 %v237_v5  ;;  %v193_v9 = vld [vmem:[%s329_s2] ss:$0 sm:$0xff]  ;;  %s185_s9 = sshll.u32 %s264_s3, 4  ;;  %s186_s9 = int_to_ptr.vmem [resolvable:$true] %s185_s9 }
   0x9   :  { %216 = vmatmul.mubr.msk.bf16.vlgmr.msra.gmra.mxu0 %vm47_vm1, %v23_v6  ;;  %223 = vmatprep.subr.bf16.mxu1 %v262_v1  ;;  %v197_v17 = vld [vmem:[%s331_s4] ss:$0 sm:$0xff]  ;;  %s240_s2 = scalar_lea.vmem %s186_s9, 128  ;;  %p245_p1 = scmp.lt.s32.totalorder %s186_s9, %s186_s9 }
   0xa   :  { %p241_p0 = scmp.ne.s32.totalorder %s186_s9, %s240_s2  ;;  %p246_p2 = scmp.lt.s32.totalorder %s240_s2, %s240_s2 }
   0xc   :  { %224 = vmatpush3.bf16.msra.mxu1 %v238_v7  ;;  %p247_p3 = por %p246_p2, %p245_p1 }
   0xd   :  { %225 = vmatprep.subr.bf16.mxu1 %v262_v1 }
   0xe   :  { %p248_p4 = pnand %p247_p3, %p241_p0 }
  0x10   :  { %226 = vmatpush3.bf16.msra.mxu1 %v239_v8 }
  0xc9   :  { %v85_v10 = vpop.f32.mrf.mxu0 }
  0xca   :  { %v86_v11 = vadd.f32 %v193_v9, %v85_v10 }
  0xcb   :  { %v217_v12 = vpop.f32.mrf.mxu0 }
  0xcc   :  { %v91_v13 = vmax.f32 %v86_v11, 0.0 }
  0xcd   :  { %v88_v14 = vpop.f32.mrf.mxu0 }
  0xce   :  { %v92_v15 = vpack.c.bf16 %v91_v13, %v91_v13 }
  0xcf   :  { %v218_v16 = vpop.f32.mrf.mxu0 }
  0xd0   :  { %228 = vmatmul.mubr.msk.bf16.vlgmr.msra.gmra.mxu1 %vm132_vm2, %v92_v15 }
 0x190   :  { %v170_v18 = vpop.f32.mrf.mxu1 }
 0x191   :  { %v171_v19 = vadd.f32 %v197_v17, %v170_v18 }
 0x192   :  { %v229_v20 = vpop.f32.mrf.mxu1 }
 0x193   :  { %v176_v21 = vadd.f32 %v171_v19, %v22_v3 }
 0x194   :  { %v173_v22 = vpop.f32.mrf.mxu1 }
 0x195   :  { %v177_v23 = vmax.f32 %v176_v21, 0.0 }
 0x196   :  { %v230_v24 = vpop.f32.mrf.mxu1 }
 0x197   :  { %178 = vst.msk [vmem:[#allocation2] sm:$0xff] %vm47_vm1, %v177_v23 }
 0x198   :  { %251 = shalt.err (!%p248_p4)
}
 0x199   :  { %188 = dma.vmem_to_hbm [thread:$0]  %s186_s9, 128, %s332_s5, [#allocation3]  }
 0x19a   :  { %260 = dma.done.wait [#allocation3], 128  }
 0x19b   :  { %261 = vsyncadd [#allocation3], 4294967168 }
 0x19c   :  { %192 = vsyncpa [#allocation3], 1 }

</bundles_post_ra>
